<compile_context>
chip_gen: v7x
topology: tpu7x:2x2x1
jax: 0.10.0
libtpu: 0.0.40
codegen_flags: <defaults>
</compile_context>

<pallas_src>
import jax
import jax.numpy as jnp
from jax import lax
from jax.experimental import pallas as pl
from jax.experimental.pallas import tpu as pltpu


def _leaky(v):
    # nn.LeakyReLU default negative_slope = 0.01
    return jnp.where(v > 0, v, 0.01 * v)


def ep_kernel(x_ref, win_ref, adw_ref, w2_ref, b_ref, o_ref):
    # x_ref : (B, H, W*Cin)      lane-dense input block, bf16
    # win_ref: (W*Cin, 2*W*Cout) block-diag [1x1_0 | downsample], BN folded, bf16
    # adw_ref: (W*Cout, 3*W*Cout) banded depthwise matrices [dy=-1 | dy=0 | dy=+1], bf16
    # w2_ref : (W*Cout, W*Cout)  block-diag 1x1_1, BN folded, bf16
    # b_ref  : (4, W*Cout)       lane-tiled f32 biases [b0, b1, b2, bd]
    # o_ref  : (B, H, W*Cout)    lane-dense f32 output block
    B, H, WCi = x_ref.shape
    WC = o_ref.shape[2]
    BH = B * H
    cdt = win_ref.dtype

    bb = b_ref[...]                               # (4, WC) f32
    b0, b1, b2, bd = bb[0:1], bb[1:2], bb[2:3], bb[3:4]

    x2 = x_ref[...].reshape(BH, WCi)              # leading-dim collapse (cheap), bf16

    # ---- conv1x1_0 + downsample fused: one bf16 matmul, split at a 128-lane boundary ----
    y = jnp.dot(x2, win_ref[...], preferred_element_type=jnp.float32)  # (BH, 2*WC) f32
    y0 = _leaky(y[:, :WC] + b0)                   # (BH, WC) f32
    idn = y[:, WC:] + bd                          # (BH, WC) f32

    # ---- depthwise 3x3 (stride=1, pad=1): one wide banded matmul over w,
    #      XLU sublane rolls + iota masks for the dy=+/-1 taps ----
    z = jnp.dot(y0.astype(cdt), adw_ref[...],
                preferred_element_type=jnp.float32)                    # (BH, 3*WC) f32
    z_m1 = z[:, 0 * WC:1 * WC]                    # contribution needing row h-1
    z_0 = z[:, 1 * WC:2 * WC]                     # row h
    z_p1 = z[:, 2 * WC:3 * WC]                    # contribution needing row h+1

    row = lax.broadcasted_iota(jnp.int32, (BH, WC), 0)
    h = row % H
    down = pltpu.roll(z_m1, shift=1, axis=0)      # out[h] gets z_m1[h-1]
    down = jnp.where(h == 0, 0.0, down)           # zero-pad top row (per image)
    up = pltpu.roll(z_p1, shift=BH - 1, axis=0)   # out[h] gets z_p1[h+1]
    up = jnp.where(h == H - 1, 0.0, up)           # zero-pad bottom row (per image)

    y1 = _leaky(z_0 + down + up + b1)             # (BH, WC) f32

    # ---- conv1x1_1 (no relu) + residual add + leaky ----
    y2 = jnp.dot(y1.astype(cdt), w2_ref[...],
                 preferred_element_type=jnp.float32) + b2
    o_ref[...] = _leaky(idn + y2).reshape(B, H, WC)


def prepare_params(params, W, compute_dtype=jnp.bfloat16):
    """Fold BN into the convs and expand to the lane-dense kron/banded weights.

    Call once per parameter set and reuse the result across ep_forward calls.
    """
    cdt = compute_dtype
    f32 = jnp.float32

    w0s = params["w0"] * params["s0"]       # (Cin, Cout)
    wds = params["wd"] * params["sd"]       # (Cin, Cout)
    w2s = params["w2"] * params["s2"]       # (Cout, Cout)
    wdws = params["wdw"] * params["s1"][0]  # (3, 3, Cout)

    eye_w = jnp.eye(W, dtype=f32)

    # block-diagonal 1x1 weights acting directly on the lane-dense (w, c) layout;
    # conv1x1_0 and downsample concatenated so the kernel does one matmul over x.
    w_in = jnp.concatenate([jnp.kron(eye_w, w0s), jnp.kron(eye_w, wds)],
                           axis=1).astype(cdt)                  # (W*Cin, 2*W*Cout)

    # banded depthwise matrices: A_dy[(w+dx)*C + c, w*C + c] = k[dy+1, dx+1, c]
    # (the w-boundary zero padding falls out of the band structure automatically)
    def band(dy):
        return sum(jnp.kron(jnp.eye(W, k=-dx, dtype=f32),
                            jnp.diag(wdws[dy + 1, dx + 1, :]))
                   for dx in (-1, 0, 1))

    a_cat = jnp.concatenate([band(-1), band(0), band(1)],
                            axis=1).astype(cdt)                 # (W*Cout, 3*W*Cout)
    w2_big = jnp.kron(eye_w, w2s).astype(cdt)                   # (W*Cout, W*Cout)

    biases = jnp.stack([jnp.tile(params["b0"][0], W),
                        jnp.tile(params["b1"][0], W),
                        jnp.tile(params["b2"][0], W),
                        jnp.tile(params["bd"][0], W)], axis=0).astype(f32)  # (4, W*Cout)

    return dict(w_in=w_in, a_cat=a_cat, w2_big=w2_big, biases=biases)


def _choose_batch_tile(N, H, target_rows=256):
    """Target >=target_rows matmul rows per step while keeping >=2..4 grid steps."""
    cap_rows = max(1, target_rows // max(H, 1))
    if N >= 4:
        cap_grid = max(1, N // 4)       # >=4 steps so pipelining overlaps DMA
    else:
        cap_grid = max(1, N // 2)       # still >=2 steps for v7x's 2 TensorCores
    cap = max(1, min(cap_rows, cap_grid))
    bt = 1
    for d in range(1, cap + 1):         # largest divisor of N <= cap
        if N % d == 0:
            bt = d
    return bt


def ep_forward(x_nhwc, prepared, *, batch_tile=None):
    """x_nhwc: (N, H, W, Cin) float32 -> (N, H, W, Cout) float32 (stride=1 EP block)."""
    N, H, W, Cin = x_nhwc.shape
    WCi = W * Cin
    WCo2 = prepared["w_in"].shape[1]
    WCo = WCo2 // 2
    Cout = WCo // W
    cdt = prepared["w_in"].dtype

    if batch_tile is None:
        batch_tile = _choose_batch_tile(N, H)
    assert N % batch_tile == 0

    x_ld = x_nhwc.reshape(N, H, WCi).astype(cdt)   # lane-dense bf16 input (contiguous)

    # Explicit VMEM budget (safe on v7x's 64 MiB physical / 32 MiB scoped default).
    isz = jnp.dtype(cdt).itemsize
    blk_x = batch_tile * H * WCi * isz
    blk_o = batch_tile * H * WCo * 4
    w_bytes = (WCi * 2 * WCo + WCo * 3 * WCo + WCo * WCo) * isz + 4 * WCo * 4
    interm = 8 * batch_tile * H * 3 * WCo * 4
    vmem_limit = int(min(max(2 * (blk_x + blk_o + w_bytes) + interm, 4 << 20), 32 << 20))

    out_ld = pl.pallas_call(
        ep_kernel,
        out_shape=jax.ShapeDtypeStruct((N, H, WCo), jnp.float32),
        grid=(N // batch_tile,),
        in_specs=[
            pl.BlockSpec((batch_tile, H, WCi), lambda n: (n, 0, 0)),  # x
            pl.BlockSpec((WCi, 2 * WCo), lambda n: (0, 0)),           # fused 1x1_0 | downsample
            pl.BlockSpec((WCo, 3 * WCo), lambda n: (0, 0)),           # banded depthwise
            pl.BlockSpec((WCo, WCo), lambda n: (0, 0)),               # 1x1_1
            pl.BlockSpec((4, WCo), lambda n: (0, 0)),                 # biases
        ],
        out_specs=pl.BlockSpec((batch_tile, H, WCo), lambda n: (n, 0, 0)),
        compiler_params=pltpu.CompilerParams(
            dimension_semantics=("parallel",),
            vmem_limit_bytes=vmem_limit),
    )(x_ld, prepared["w_in"], prepared["a_cat"], prepared["w2_big"], prepared["biases"])

    return out_ld.reshape(N, H, W, Cout)


def _fold_bn(gamma, beta, mean, var, eps=1e-5):
    scale = gamma / jnp.sqrt(var + eps)
    bias = beta - mean * scale
    return scale[None, :], bias[None, :]     # (1, C)


def make_params(key, cin, cout):
    ks = jax.random.split(key, 20)
    i = iter(range(20))

    def bn_params(c):
        gamma = jax.random.normal(ks[next(i)], (c,), jnp.float32) * 0.1 + 1.0
        beta = jax.random.normal(ks[next(i)], (c,), jnp.float32) * 0.1
        mean = jax.random.normal(ks[next(i)], (c,), jnp.float32) * 0.1
        var = jax.random.uniform(ks[next(i)], (c,), jnp.float32, 0.5, 1.5)
        return _fold_bn(gamma, beta, mean, var)

    w0 = jax.random.normal(ks[next(i)], (cin, cout), jnp.float32) * 0.2
    s0, b0 = bn_params(cout)
    wdw = jax.random.normal(ks[next(i)], (3, 3, cout), jnp.float32) * 0.2
    s1, b1 = bn_params(cout)
    w2 = jax.random.normal(ks[next(i)], (cout, cout), jnp.float32) * 0.2
    s2, b2 = bn_params(cout)
    wd = jax.random.normal(ks[next(i)], (cin, cout), jnp.float32) * 0.2
    sd, bd = bn_params(cout)
    return dict(w0=w0, s0=s0, b0=b0, wdw=wdw, s1=s1, b1=b1,
                w2=w2, s2=s2, b2=b2, wd=wd, sd=sd, bd=bd)


def ep_reference(x_nhwc, p):
    """Pure-JAX f32 reference (lax conv for depthwise) to validate the kernel."""
    cout = p["w0"].shape[1]
    conv1x1 = lambda x, w: jnp.einsum("nhwc,co->nhwo", x, w)
    bn = lambda x, s, b: x * s + b

    y0 = _leaky(bn(conv1x1(x_nhwc, p["w0"]), p["s0"], p["b0"]))
    dw_w = p["wdw"][:, :, None, :]   # HWIO with I=1 (depthwise)
    y1 = lax.conv_general_dilated(
        y0, dw_w, window_strides=(1, 1), padding="SAME",
        dimension_numbers=("NHWC", "HWIO", "NHWC"),
        feature_group_count=cout)
    y1 = _leaky(bn(y1, p["s1"], p["b1"]))
    y2 = bn(conv1x1(y1, p["w2"]), p["s2"], p["b2"])
    idn = bn(conv1x1(x_nhwc, p["wd"]), p["sd"], p["bd"])
    return _leaky(idn + y2)


if __name__ == "__main__":
    N, Cin, H, W = 2, 4, 16, 16
    Cout = 8            # input_channels != output_channels -> downsample branch active

    key = jax.random.PRNGKey(0)
    kx, kp = jax.random.split(key)

    x_nchw = jax.random.normal(kx, (N, Cin, H, W), jnp.float32)   # PyTorch layout
    x_nhwc = jnp.transpose(x_nchw, (0, 2, 3, 1))                  # kernel layout

    params = make_params(kp, Cin, Cout)
    prepared = prepare_params(params, W)          # expand/fold once, reuse across calls

    out_nhwc = jax.block_until_ready(ep_forward(x_nhwc, prepared))
    ref_nhwc = jax.block_until_ready(ep_reference(x_nhwc, params))

    assert out_nhwc.shape == (N, H, W, Cout)
    # bf16 matmul operands vs f32 reference -> loosen tolerance accordingly
    max_err = float(jnp.max(jnp.abs(out_nhwc - ref_nhwc)))
    assert max_err < 5e-2, max_err

    # back to PyTorch NCHW layout for the module's output convention
    out_nchw = jnp.transpose(out_nhwc, (0, 3, 1, 2))
    jax.block_until_ready(out_nchw)
    print("KERNEL_OK")
</pallas_src>

<mosaic_0001>
module attributes {stable_mosaic.version = 11 : i64} {
  func.func @ep_kernel(%arg0: i32, %arg1: memref<1x16x64xbf16, #tpu.memory_space<vmem>>, %arg2: memref<64x256xbf16, #tpu.memory_space<vmem>>, %arg3: memref<128x384xbf16, #tpu.memory_space<vmem>>, %arg4: memref<128x128xbf16, #tpu.memory_space<vmem>>, %arg5: memref<4x128xf32, #tpu.memory_space<vmem>>, %arg6: memref<1x16x128xf32, #tpu.memory_space<vmem>>) attributes {dimension_semantics = [#tpu.dimension_semantics<parallel>], iteration_bounds = array<i64: 2>, scalar_prefetch = 0 : i64, scratch_operands = 0 : i64, tpu.core_type = #tpu.core_type<tc>, window_params = [{transform_indices = @transform_0, window_bounds = array<i64: 1, 16, 64>}, {pipeline_mode = #tpu.pipeline_mode<synchronous>, transform_indices = @transform_1, window_bounds = array<i64: 64, 256>}, {pipeline_mode = #tpu.pipeline_mode<synchronous>, transform_indices = @transform_2, window_bounds = array<i64: 128, 384>}, {pipeline_mode = #tpu.pipeline_mode<synchronous>, transform_indices = @transform_3, window_bounds = array<i64: 128, 128>}, {pipeline_mode = #tpu.pipeline_mode<synchronous>, transform_indices = @transform_4, window_bounds = array<i64: 4, 128>}, {transform_indices = @transform_5, window_bounds = array<i64: 1, 16, 128>}]} {
    %c0 = arith.constant 0 : index
    %c0_0 = arith.constant 0 : index
    %0 = vector.load %arg5[%c0, %c0_0] : memref<4x128xf32, #tpu.memory_space<vmem>>, vector<4x128xf32>
    %1 = vector.extract_strided_slice %0 {offsets = [0, 0], sizes = [1, 128], strides = [1, 1]} : vector<4x128xf32> to vector<1x128xf32>
    %2 = vector.extract_strided_slice %0 {offsets = [1, 0], sizes = [1, 128], strides = [1, 1]} : vector<4x128xf32> to vector<1x128xf32>
    %3 = vector.extract_strided_slice %0 {offsets = [2, 0], sizes = [1, 128], strides = [1, 1]} : vector<4x128xf32> to vector<1x128xf32>
    %4 = vector.extract_strided_slice %0 {offsets = [3, 0], sizes = [1, 128], strides = [1, 1]} : vector<4x128xf32> to vector<1x128xf32>
    %c0_1 = arith.constant 0 : index
    %c0_2 = arith.constant 0 : index
    %c0_3 = arith.constant 0 : index
    %5 = vector.load %arg1[%c0_1, %c0_2, %c0_3] : memref<1x16x64xbf16, #tpu.memory_space<vmem>>, vector<1x16x64xbf16>
    %6 = vector.shape_cast %5 : vector<1x16x64xbf16> to vector<16x64xbf16>
    %c0_4 = arith.constant 0 : index
    %c0_5 = arith.constant 0 : index
    %7 = vector.load %arg2[%c0_4, %c0_5] : memref<64x256xbf16, #tpu.memory_space<vmem>>, vector<64x256xbf16>
    %cst = arith.constant dense<0.000000e+00> : vector<16x256xf32>
    %8 = tpu.matmul %6, %7, %cst {dimension_numbers = #tpu.dot_dimension_numbers<[1], [0], [0], [1], [0, 0, 1, 1], [], []>} : vector<16x64xbf16>, vector<64x256xbf16>, vector<16x256xf32> -> vector<16x256xf32>
    %9 = vector.extract_strided_slice %8 {offsets = [0, 0], sizes = [16, 128], strides = [1, 1]} : vector<16x256xf32> to vector<16x128xf32>
    %10 = vector.broadcast %1 : vector<1x128xf32> to vector<16x128xf32>
    %11 = arith.addf %9, %10 : vector<16x128xf32>
    %cst_6 = arith.constant 0.000000e+00 : f32
    %12 = vector.broadcast %cst_6 : f32 to vector<16x128xf32>
    %13 = arith.cmpf ogt, %11, %12 : vector<16x128xf32>
    %cst_7 = arith.constant 0.00999999977 : f32
    %14 = vector.broadcast %cst_7 : f32 to vector<16x128xf32>
    %15 = arith.mulf %14, %11 : vector<16x128xf32>
    %16 = arith.select %13, %11, %15 : vector<16x128xi1>, vector<16x128xf32>
    %17 = vector.extract_strided_slice %8 {offsets = [0, 128], sizes = [16, 128], strides = [1, 1]} : vector<16x256xf32> to vector<16x128xf32>
    %18 = vector.broadcast %4 : vector<1x128xf32> to vector<16x128xf32>
    %19 = arith.addf %17, %18 : vector<16x128xf32>
    %20 = arith.truncf %16 : vector<16x128xf32> to vector<16x128xbf16>
    %c0_8 = arith.constant 0 : index
    %c0_9 = arith.constant 0 : index
    %21 = vector.load %arg3[%c0_8, %c0_9] : memref<128x384xbf16, #tpu.memory_space<vmem>>, vector<128x384xbf16>
    %cst_10 = arith.constant dense<0.000000e+00> : vector<16x384xf32>
    %22 = tpu.matmul %20, %21, %cst_10 {dimension_numbers = #tpu.dot_dimension_numbers<[1], [0], [0], [1], [0, 0, 1, 1], [], []>} : vector<16x128xbf16>, vector<128x384xbf16>, vector<16x384xf32> -> vector<16x384xf32>
    %23 = vector.extract_strided_slice %22 {offsets = [0, 0], sizes = [16, 128], strides = [1, 1]} : vector<16x384xf32> to vector<16x128xf32>
    %24 = vector.extract_strided_slice %22 {offsets = [0, 128], sizes = [16, 128], strides = [1, 1]} : vector<16x384xf32> to vector<16x128xf32>
    %25 = vector.extract_strided_slice %22 {offsets = [0, 256], sizes = [16, 128], strides = [1, 1]} : vector<16x384xf32> to vector<16x128xf32>
    %26 = tpu.iota {dimensions = array<i32: 0>} : vector<16x128xi32>
    %c16_i32 = arith.constant 16 : i32
    %c0_i32 = arith.constant 0 : i32
    %27 = arith.cmpi eq, %c16_i32, %c0_i32 : i32
    %c1_i32 = arith.constant 1 : i32
    %28 = arith.select %27, %c1_i32, %c16_i32 : i32
    %29 = vector.broadcast %28 : i32 to vector<16x128xi32>
    %30 = arith.remsi %26, %29 : vector<16x128xi32>
    %c0_i32_11 = arith.constant 0 : i32
    %31 = vector.broadcast %c0_i32_11 : i32 to vector<16x128xi32>
    %32 = arith.cmpi ne, %30, %31 : vector<16x128xi32>
    %c0_i32_12 = arith.constant 0 : i32
    %33 = vector.broadcast %c0_i32_12 : i32 to vector<16x128xi32>
    %34 = arith.cmpi slt, %30, %33 : vector<16x128xi32>
    %c0_i32_13 = arith.constant 0 : i32
    %35 = arith.cmpi slt, %28, %c0_i32_13 : i32
    %36 = vector.broadcast %35 : i1 to vector<16x128xi1>
    %37 = vector.broadcast %36 : vector<16x128xi1> to vector<16x128xi1>
    %38 = arith.xori %34, %37 : vector<16x128xi1>
    %39 = arith.andi %38, %32 : vector<16x128xi1>
    %40 = vector.broadcast %28 : i32 to vector<16x128xi32>
    %41 = arith.addi %30, %40 : vector<16x128xi32>
    %42 = arith.select %39, %41, %30 : vector<16x128xi1>, vector<16x128xi32>
    %c1_i32_14 = arith.constant 1 : i32
    %43 = tpu.dynamic_rotate %23 by %c1_i32_14 dim 0 : vector<16x128xf32>, i32 -> vector<16x128xf32>
    %c0_i32_15 = arith.constant 0 : i32
    %44 = vector.broadcast %c0_i32_15 : i32 to vector<16x128xi32>
    %45 = arith.cmpi eq, %42, %44 : vector<16x128xi32>
    %cst_16 = arith.constant 0.000000e+00 : f32
    %46 = vector.broadcast %cst_16 : f32 to vector<16x128xf32>
    %47 = arith.select %45, %46, %43 : vector<16x128xi1>, vector<16x128xf32>
    %c15_i32 = arith.constant 15 : i32
    %48 = tpu.dynamic_rotate %25 by %c15_i32 dim 0 : vector<16x128xf32>, i32 -> vector<16x128xf32>
    %c15_i32_17 = arith.constant 15 : i32
    %49 = vector.broadcast %c15_i32_17 : i32 to vector<16x128xi32>
    %50 = arith.cmpi eq, %42, %49 : vector<16x128xi32>
    %cst_18 = arith.constant 0.000000e+00 : f32
    %51 = vector.broadcast %cst_18 : f32 to vector<16x128xf32>
    %52 = arith.select %50, %51, %48 : vector<16x128xi1>, vector<16x128xf32>
    %53 = arith.addf %24, %47 : vector<16x128xf32>
    %54 = arith.addf %53, %52 : vector<16x128xf32>
    %55 = vector.broadcast %2 : vector<1x128xf32> to vector<16x128xf32>
    %56 = arith.addf %54, %55 : vector<16x128xf32>
    %cst_19 = arith.constant 0.000000e+00 : f32
    %57 = vector.broadcast %cst_19 : f32 to vector<16x128xf32>
    %58 = arith.cmpf ogt, %56, %57 : vector<16x128xf32>
    %cst_20 = arith.constant 0.00999999977 : f32
    %59 = vector.broadcast %cst_20 : f32 to vector<16x128xf32>
    %60 = arith.mulf %59, %56 : vector<16x128xf32>
    %61 = arith.select %58, %56, %60 : vector<16x128xi1>, vector<16x128xf32>
    %62 = arith.truncf %61 : vector<16x128xf32> to vector<16x128xbf16>
    %c0_21 = arith.constant 0 : index
    %c0_22 = arith.constant 0 : index
    %63 = vector.load %arg4[%c0_21, %c0_22] : memref<128x128xbf16, #tpu.memory_space<vmem>>, vector<128x128xbf16>
    %cst_23 = arith.constant dense<0.000000e+00> : vector<16x128xf32>
    %64 = tpu.matmul %62, %63, %cst_23 {dimension_numbers = #tpu.dot_dimension_numbers<[1], [0], [0], [1], [0, 0, 1, 1], [], []>} : vector<16x128xbf16>, vector<128x128xbf16>, vector<16x128xf32> -> vector<16x128xf32>
    %65 = vector.broadcast %3 : vector<1x128xf32> to vector<16x128xf32>
    %66 = arith.addf %64, %65 : vector<16x128xf32>
    %67 = arith.addf %19, %66 : vector<16x128xf32>
    %cst_24 = arith.constant 0.000000e+00 : f32
    %68 = vector.broadcast %cst_24 : f32 to vector<16x128xf32>
    %69 = arith.cmpf ogt, %67, %68 : vector<16x128xf32>
    %cst_25 = arith.constant 0.00999999977 : f32
    %70 = vector.broadcast %cst_25 : f32 to vector<16x128xf32>
    %71 = arith.mulf %70, %67 : vector<16x128xf32>
    %72 = arith.select %69, %67, %71 : vector<16x128xi1>, vector<16x128xf32>
    %73 = vector.shape_cast %72 : vector<16x128xf32> to vector<1x16x128xf32>
    %c0_26 = arith.constant 0 : index
    %c0_27 = arith.constant 0 : index
    %c0_28 = arith.constant 0 : index
    %74 = vector.load %arg6[%c0_26, %c0_27, %c0_28] : memref<1x16x128xf32, #tpu.memory_space<vmem>>, vector<1x16x128xf32>
    tpu.vector_store %arg6[%c0_26, %c0_27, %c0_28], %73 {strides = array<i32>} : memref<1x16x128xf32, #tpu.memory_space<vmem>>, vector<1x16x128xf32>,
    return
  }
  func.func @transform_0(%arg0: i32) -> (i32, i32, i32) {
    %c0_i32 = arith.constant 0 : i32
    %c0_i32_0 = arith.constant 0 : i32
    %c0_i32_1 = arith.constant 0 : i32
    return %arg0, %c0_i32, %c0_i32_0 : i32, i32, i32
  }
  func.func @transform_1(%arg0: i32) -> (i32, i32) {
    %c0_i32 = arith.constant 0 : i32
    %c0_i32_0 = arith.constant 0 : i32
    %c0_i32_1 = arith.constant 0 : i32
    return %c0_i32, %c0_i32_0 : i32, i32
  }
  func.func @transform_2(%arg0: i32) -> (i32, i32) {
    %c0_i32 = arith.constant 0 : i32
    %c0_i32_0 = arith.constant 0 : i32
    %c0_i32_1 = arith.constant 0 : i32
    return %c0_i32, %c0_i32_0 : i32, i32
  }
  func.func @transform_3(%arg0: i32) -> (i32, i32) {
    %c0_i32 = arith.constant 0 : i32
    %c0_i32_0 = arith.constant 0 : i32
    %c0_i32_1 = arith.constant 0 : i32
    return %c0_i32, %c0_i32_0 : i32, i32
  }
  func.func @transform_4(%arg0: i32) -> (i32, i32) {
    %c0_i32 = arith.constant 0 : i32
    %c0_i32_0 = arith.constant 0 : i32
    %c0_i32_1 = arith.constant 0 : i32
    return %c0_i32, %c0_i32_0 : i32, i32
  }
  func.func @transform_5(%arg0: i32) -> (i32, i32, i32) {
    %c0_i32 = arith.constant 0 : i32
    %c0_i32_0 = arith.constant 0 : i32
    %c0_i32_1 = arith.constant 0 : i32
    return %arg0, %c0_i32, %c0_i32_0 : i32, i32, i32
  }
}

</mosaic_0001>

<bundles_post_ra>
// kernel: tpu_custom_call.1
= control target key start
LH: loop header
LB: loop body
LE: loop exit
PB: predicated region body
PF: predicated region fallthrough
CT: control target
= control target key end

     0   :  { %10 = vsyncpa [#allocation3], 0  ;;  %s1777_s0 = inlined_call_operand.hbm [shape: bf16[2,16,64], index: 0, kind: input, shape index: {}]   ;;  %s1778_s1 = inlined_call_operand.hbm [shape: bf16[64,256], index: 1, kind: input, shape index: {}]   ;;  %s1779_s2 = inlined_call_operand.hbm [shape: bf16[128,384], index: 2, kind: input, shape index: {}]   ;;  %s1780_s3 = inlined_call_operand.hbm [shape: bf16[128,128], index: 3, kind: input, shape index: {}]   ;;  %s1781_s4 = inlined_call_operand.vmem [shape: f32[4,128], index: 4, kind: input, shape index: {}]   ;;  %s1782_s5 = inlined_call_operand.hbm [shape: f32[2,16,128], index: 5, kind: output, shape index: {}]  }
   0x1   :  { %12 = vsyncpa [#allocation3 + $0x1], 0 }
   0x2   :  { %13 = vsyncpa [#allocation6], 0 }
   0x3   :  { %14 = vsyncpa [#allocation9], 0 }
   0x4   :  { %15 = vsyncpa [#allocation4], 0 }
   0x5   :  { %17 = vsyncpa [#allocation4 + $0x1], 0  ;;  %s1450_s18 = smov 0   ;;  %s1452_s19 = smov 0  }
   0x6   :  { %s1454_s20 = smov 0   ;;  %s1456_s21 = smov 0  }
   0x7 LB: > { %s1471_s22 = sadd.s32 4294967295, %s1402_s21   ;;  %s951_s23 = sadd.s32 4294967294, %s1402_s21   ;;  %s1402_s21 = sphi %s1456_s21, %s1809_s21   ;;  %s1398_s20 = sphi %s1454_s20, %s1808_s20   ;;  %s1394_s19 = sphi %s1452_s19, %s1807_s19   ;;  %s1390_s18 = sphi %s1450_s18, %s1806_s18  }
   0x8   : > { %p43_p0 = scmp.ne.s32.totalorder %s1394_s19, %s1390_s18  ;;  %p1783_p1 = scmp.eq.s32.totalorder %s1471_s22, 0 }
   0x9   : > { %p157_p3 = scmp.eq.s32.totalorder %s951_s23, 1  ;;  %p952_p5 = scmp.ge.s32.totalorder %s1402_s21, 1 }
   0xa   : > { %p1480_p4 = por %p1783_p1, %p43_p0  ;;  %p164_p7 = scmp.lt.s32.totalorder %s1402_s21, 3 }
   0xb   : > { %p1485_p6 = por %p157_p3, %p43_p0  ;;  %s1404_s27 = smov [#allocation5]  }
   0xc   : > { %s1786_s24 = scalar_select %p1480_p4, 1, 0 }
   0xd   : > { %s1787_s25 = scalar_select %p1485_p6, 1, 0 }
   0xe   : > { %p1490_p8 = pnand %p952_p5, %p164_p7  ;;  %s176_s28 = sshll.u32 %s1404_s27, 4  ;;  %s1494_s28 = int_to_ptr.vmem [resolvable:$true] %s176_s28 }
   0xf   : > { %s1405_s30 = smov [#allocation7]   ;;  %s1214_s9 = scalar_lea.hbm %s1778_s1, 1024 }
  0x10   : > { %s1788_s26 = scalar_select %p1490_p8, 1, 0 }
  0x11   : > { %p1089_p9 = pneg %p1490_p8  ;;  %s189_s6 = sshll.u32 %s1405_s30, 4  ;;  %s1505_s6 = int_to_ptr.vmem [resolvable:$true] %s189_s6 }
  0x12   : > { %p1215_p12 = scmp.ne.s32.totalorder %s1778_s1, %s1214_s9  ;;  %p1221_p5 = scmp.lt.u32.totalorder %s1214_s9, %s1778_s1 }
  0x13   : > { %p1501_p11 = pnand %p1089_p9, %p1783_p1 }
  0x15   : > { %p1515_p13 = pneg %p1501_p11 }
  0x17   : > { %p1217_p0 = pnand %p1515_p13, %p1215_p12 }
  0x19   : > { %p1218_p3 = pneg %p1217_p0 }
  0x1b   : > { %p1223_p7 = pnand %p1221_p5, %p1218_p3 }
  0x1d   : > { %1226 = shalt.err (!%p1223_p7)
}
  0x1e   : > { %s1227_s15 = scalar_lea.vmem %s1494_s28, 1024  ;;  %p1235_p2 = scmp.lt.s32.totalorder %s1494_s28, %s1494_s28 }
  0x1f   : > { %p1228_p9 = scmp.ne.s32.totalorder %s1494_s28, %s1227_s15  ;;  %p1236_p6 = scmp.lt.s32.totalorder %s1227_s15, %s1227_s15 }
  0x21   : > { %p1230_p10 = pnand %p1228_p9, %p1515_p13  ;;  %p1237_p12 = por %p1236_p6, %p1235_p2 }
  0x23   : > { %p1231_p1 = pneg %p1230_p10 }
  0x25   : > { %p1238_p0 = pnand %p1237_p12, %p1231_p1 }
  0x27   : > { %1241 = shalt.err (!%p1238_p0)
}
  0x28   : > { %s1406_s16 = smov 128   ;;  %s1407_s17 = smov 8  }
  0x29   : > { %1092 = dma.hbm_to_vmem [thread:$0]  (!%p1501_p11), %s1778_s1, 1024, %s1494_s28, [#allocation6], %s1406_s16, %s1406_s16, %s1407_s17  }
  0x2a   : > { %s1242_s8 = scalar_lea.hbm %s1779_s2, 3072 }
  0x2b   : > { %p1243_p2 = scmp.ne.s32.totalorder %s1779_s2, %s1242_s8  ;;  %p1249_p10 = scmp.lt.u32.totalorder %s1242_s8, %s1779_s2 }
  0x2d   : > { %p1245_p1 = pnand %p1243_p2, %p1515_p13 }
  0x2f   : > { %p1246_p6 = pneg %p1245_p1 }
  0x31   : > { %p1251_p3 = pnand %p1249_p10, %p1246_p6 }
  0x33   : > { %1254 = shalt.err (!%p1251_p3)
}
  0x34   : > { %s1255_s28 = scalar_lea.vmem %s1505_s6, 3072  ;;  %p1263_p12 = scmp.lt.s32.totalorder %s1505_s6, %s1505_s6 }
  0x35   : > { %p1256_p5 = scmp.ne.s32.totalorder %s1505_s6, %s1255_s28  ;;  %p1264_p0 = scmp.lt.s32.totalorder %s1255_s28, %s1255_s28 }
  0x37   : > { %p1258_p7 = pnand %p1256_p5, %p1515_p13  ;;  %p1265_p2 = por %p1264_p0, %p1263_p12 }
  0x39   : > { %p1259_p9 = pneg %p1258_p7 }
  0x3b   : > { %p1266_p1 = pnand %p1265_p2, %p1259_p9 }
  0x3d   : > { %1269 = shalt.err (!%p1266_p1)
}
  0x3e   : > { %s1408_s14 = smov 192   ;;  %s1409_s15 = smov 12  }
  0x3f   : > { %1095 = dma.hbm_to_vmem [thread:$0]  (!%p1501_p11), %s1779_s2, 3072, %s1505_s6, [#allocation6], %s1408_s14, %s1408_s14, %s1409_s15  }
  0x40   : > { %s1410_s23 = smov [#allocation8]   ;;  %s1270_s8 = scalar_lea.hbm %s1780_s3, 1024 }
  0x41   : > { %s202_s27 = sshll.u32 %s1410_s23, 4  ;;  %p1271_p6 = scmp.ne.s32.totalorder %s1780_s3, %s1270_s8  ;;  %s203_s27 = int_to_ptr.vmem [resolvable:$true] %s202_s27 }
  0x42   : > { %p1277_p5 = scmp.lt.u32.totalorder %s1270_s8, %s1780_s3 }
  0x43   : > { %p1273_p10 = pnand %p1271_p6, %p1515_p13 }
  0x45   : > { %p1274_p3 = pneg %p1273_p10 }
  0x47   : > { %p1279_p7 = pnand %p1277_p5, %p1274_p3 }
  0x49   : > { %1282 = shalt.err (!%p1279_p7)
}
  0x4a   : > { %s1283_s6 = scalar_lea.vmem %s203_s27, 1024  ;;  %p1291_p2 = scmp.lt.s32.totalorder %s203_s27, %s203_s27 }
  0x4b   : > { %p1284_p9 = scmp.ne.s32.totalorder %s203_s27, %s1283_s6  ;;  %p1292_p1 = scmp.lt.s32.totalorder %s1283_s6, %s1283_s6 }
  0x4d   : > { %p1286_p12 = pnand %p1284_p9, %p1515_p13  ;;  %p1293_p4 = por %p1292_p1, %p1291_p2 }
  0x4f   : > { %p1287_p0 = pneg %p1286_p12 }
  0x51   : > { %p1294_p8 = pnand %p1293_p4, %p1287_p0 }
  0x53   : > { %1297 = shalt.err (!%p1294_p8)
}
  0x54   : > { %s1411_s28 = smov 64   ;;  %s1412_s12 = smov 4  }
  0x55   : > { %1098 = dma.hbm_to_vmem [thread:$0]  (!%p1501_p11), %s1780_s3, 1024, %s203_s27, [#allocation9], %s1411_s28, %s1411_s28, %s1412_s12  }
  0x56   : > { %s1581_s16 = sadd.s32 1, %s1402_s21   ;;  %s30_s23 = sadd.s32 1, %s1398_s20 }
  0x57   : > { %s27_s17 = ssub.s32 %s1402_s21, %s1581_s16  ;;  %p37_p8 = scmp.ne.s32.totalorder %s1398_s20, %s1394_s19 }
  0x58   : > { %p28_p4 = scmp.eq.s32.totalorder %s27_s17, 0  ;;  %p38_p13 = scmp.eq.s32.totalorder %s1402_s21, 0 }
  0x59   : > { %p1110_p6 = scmp.lt.s32.totalorder %s1402_s21, 2  ;;  %p1791_p3 = scmp.eq.s32.totalorder %s1471_s22, 1 }
  0x5a   : > { %s1591_s30 = scalar_select %p28_p4, %s1398_s20, %s30_s23  }
  0x5b   : > { %p39_p10 = por %p38_p13, %p37_p8  ;;  %p1595_p5 = por %p1791_p3, %p37_p8 }
  0x5c   : > { %s219_s7 = sand.u32 1, %s1398_s20   ;;  %s1013_s8 = sshll.u32 %s1402_s21, 7 }
  0x5d   : > { %s957_s27 = sshll.u32 %s219_s7, 3  ;;  %s1604_s11 = scalar_lea.hbm %s1777_s0, %s1013_s8 }
  0x5e   : > { %s223_s13 = scalar_lea.vmem [#allocation2], %s957_s27  ;;  %p1606_p11 = pnand %p1110_p6, %p39_p10 }
  0x5f   : > { %s230_s6 = sshll.u32 %s223_s13, 4  ;;  %s1612_s15 = scalar_lea.sflag [#allocation3], %s219_s7  ;;  %s1610_s6 = int_to_ptr.vmem [resolvable:$true] %s230_s6 }
  0x60   : > { %s1298_s17 = scalar_lea.hbm %s1604_s11, 128  ;;  %p1300_p9 = pneg %p1606_p11 }
  0x61   : > { %p1299_p7 = scmp.ne.s32.totalorder %s1604_s11, %s1298_s17  ;;  %s1303_s27 = scalar_lea.hbm %s1777_s0, 256 }
  0x62   : > { %p1304_p2 = scmp.lt.u32.totalorder %s1604_s11, %s1777_s0  ;;  %p1305_p1 = scmp.lt.u32.totalorder %s1303_s27, %s1298_s17 }
  0x63   : > { %p1301_p12 = pnand %p1300_p9, %p1299_p7  ;;  %p1307_p8 = scmp.lt.u32.totalorder %s1298_s17, %s1604_s11 }
  0x64   : > { %p1306_p4 = por %p1305_p1, %p1304_p2 }
  0x65   : > { %p1302_p0 = pneg %p1301_p12 }
  0x66   : > { %p1308_p13 = por %p1307_p8, %p1306_p4 }
  0x68   : > { %p1309_p6 = pnand %p1308_p13, %p1302_p0 }
  0x6a   : > { %1312 = shalt.err (!%p1309_p6)
}
  0x6b   : > { %s1313_s7 = scalar_lea.vmem %s1610_s6, 128  ;;  %s1413_s13 = smov [#allocation2]  }
  0x6c   : > { %p1314_p10 = scmp.ne.s32.totalorder %s1610_s6, %s1313_s7  ;;  %s1318_s23 = sshll.u32 %s1413_s13, 4  ;;  %s1319_s23 = int_to_ptr.vmem [resolvable:$false] %s1318_s23 }
  0x6d   : > { %s1320_s8 = scalar_lea.vmem %s1319_s23, 256  ;;  %p1321_p12 = scmp.lt.s32.totalorder %s1610_s6, %s1319_s23 }
  0x6e   : > { %p1316_p3 = pnand %p1314_p10, %p1300_p9  ;;  %p1322_p2 = scmp.lt.s32.totalorder %s1320_s8, %s1313_s7 }
  0x70   : > { %p1317_p7 = pneg %p1316_p3  ;;  %p1323_p1 = por %p1322_p2, %p1321_p12 }
  0x72   : > { %p1324_p4 = pnand %p1323_p1, %p1317_p7 }
  0x74   : > { %1327 = shalt.err (!%p1324_p4)
}
  0x75   : > { %1102 = dma.hbm_to_vmem [thread:$0]  (!%p1606_p11), %s1604_s11, 128, %s1610_s6, %s1612_s15, %s1411_s28, %s1411_s28, %s1412_s12  }
  0x76   : > { %p1794_p9 = scmp.ne.s32.totalorder %s1788_s26, 0 }
  0x77   : > { %s1646_s17 = sand.u32 (!%p1794_p9), 1, %s1394_s19   ;;  %p1795_p0 = scmp.ne.s32.totalorder (!%p1794_p9), %s1786_s24, 0 }
  0x78   : > { %242 = sbr.rel (%p1794_p9) target bundleno = 839 (0x347), region = 40  ;;  %s961_s27 = sshll.u32 (!%p1794_p9), %s1646_s17, 3 }
  0x79   : > { %s245_s9 = scalar_lea.sflag (!%p1794_p9), [#allocation3], %s1646_s17  ;;  %s1650_s10 = scalar_lea.vmem (!%p1794_p9), [#allocation2], %s961_s27 }
  0x7f   : > { %1373 = dma.done.wait (%p1795_p0), %s245_s9, 128  }
  0x80   : > { %1375 = vsyncadd (%p1795_p0), %s245_s9, 4294967168  ;;  %p1796_p11 = scmp.eq.s32.totalorder %s1471_s22, 0 }
  0x82   : > { %1377 = dma.done.wait (%p1796_p11), [#allocation6], 4096   ;;  %p1797_p8 = pmov %p1796_p11 }
  0x84   : > { %1379 = vsyncadd (%p1797_p8), [#allocation6], 4294963200  ;;  %p1798_p13 = pmov %p1797_p8 }
  0x85   : > { %p1799_p6 = pmov %p1797_p8 }
  0x86   : > { %1381 = dma.done.wait (%p1798_p13), [#allocation9], 1024  }
  0x87   : > { %1383 = vsyncadd (%p1799_p6), [#allocation9], 4294966272  ;;  %v1414_v0 = vmov 0   ;;  %v1161_v1 = vld [vmem:[#allocation5 + $0x4] ss:$8 sps:$4 sm:$0xff]   ;;  %v1173_v14 = vld [vmem:[%s1650_s10] sm:$0xff]   ;;  %v391_v35 = vlaneseq }
  0x88   : > { %380 = vmatprep.mubr.bf16.mxu0 %v1414_v0  ;;  %602 = vmatprep.mubr.bf16.mxu1 %v1414_v0  ;;  %v1163_v2 = vld [vmem:[#allocation5] ss:$8 sps:$4 sm:$0xff]   ;;  %v1164_v3 = vld [vmem:[#allocation5 + $0x14] ss:$8 sps:$4 sm:$0xff]   ;;  %v1166_v4 = vld [vmem:[#allocation5 + $0x10] ss:$8 sps:$4 sm:$0xff]  }
  0x89   : > { %348 = vmatprep.subr.bf16.mxu0 %v1161_v1  ;;  %v1167_v5 = vld [vmem:[#allocation5 + $0x24] ss:$8 sps:$4 sm:$0xff]   ;;  %v1169_v6 = vld [vmem:[#allocation5 + $0x20] ss:$8 sps:$4 sm:$0xff]   ;;  %v1170_v9 = vld [vmem:[#allocation5 + $0x34] ss:$8 sps:$4 sm:$0xff]  }
  0x8a   : > { %349 = vmatpush1.bf16.msra.mxu0 %v1163_v2  ;;  %v1174_v7 = vld [vmem:[#allocation7 + $0x4] ss:$12 sps:$4 sm:$0xff]   ;;  %v1176_v8 = vld [vmem:[#allocation7] ss:$12 sps:$4 sm:$0xff]   ;;  %v1178_v11 = vld [vmem:[#allocation7 + $0x1c] ss:$12 sps:$4 sm:$0xff]  }
  0x8b   : > { %350 = vmatprep.subr.bf16.mxu0 %v1164_v3  ;;  %v1172_v10 = vld [vmem:[#allocation5 + $0x30] ss:$8 sps:$4 sm:$0xff]   ;;  %570 = vmatprep.subr.bf16.mxu1 %v1174_v7  ;;  %v1182_v13 = vld [vmem:[#allocation7 + $0x34] ss:$12 sps:$4 sm:$0xff]   ;;  %vm344_vm0 = vcmask 523264   ;;  %v1415_v18 = vmov 0.0  }
  0x8c   : > { %571 = vmatpush1.bf16.msra.mxu1 %v1176_v8  ;;  %v1180_v12 = vld [vmem:[#allocation7 + $0x18] ss:$12 sps:$4 sm:$0xff]   ;;  %v1177_v15 = vld [vmem:[#allocation7 + $0x8] ss:$12 sps:$4 sm:$0xff]   ;;  %v1184_v16 = vld [vmem:[#allocation7 + $0x30] ss:$12 sps:$4 sm:$0xff]  }
  0x8d   : > { %572 = vmatprep.subr.bf16.mxu1 %v1178_v11  ;;  %v1186_v17 = vld [vmem:[#allocation7 + $0x4c] ss:$12 sps:$4 sm:$0xff]   ;;  %v1188_v20 = vld [vmem:[#allocation7 + $0x48] ss:$12 sps:$4 sm:$0xff]   ;;  %v1190_v21 = vld [vmem:[#allocation7 + $0x64] ss:$12 sps:$4 sm:$0xff]  }
  0x8e   : > { %351 = vmatpush1.bf16.msra.mxu0 %v1166_v4  ;;  %v1181_v19 = vld [vmem:[#allocation7 + $0x20] ss:$12 sps:$4 sm:$0xff]   ;;  %v1185_v23 = vld [vmem:[#allocation7 + $0x38] ss:$12 sps:$4 sm:$0xff]   ;;  %v1194_v24 = vld [vmem:[#allocation7 + $0x7c] ss:$12 sps:$4 sm:$0xff]  }
  0x8f   : > { %352 = vmatprep.subr.bf16.mxu0 %v1167_v5  ;;  %v1192_v22 = vld [vmem:[#allocation7 + $0x60] ss:$12 sps:$4 sm:$0xff]   ;;  %v1196_v25 = vld [vmem:[#allocation7 + $0x78] ss:$12 sps:$4 sm:$0xff]   ;;  %v1189_v26 = vld [vmem:[#allocation7 + $0x50] ss:$12 sps:$4 sm:$0xff]  }
  0x90   : > { %573 = vmatpush1.bf16.msra.mxu1 %v1180_v12  ;;  %v1193_v27 = vld [vmem:[#allocation7 + $0x68] ss:$12 sps:$4 sm:$0xff]   ;;  %v1197_v28 = vld [vmem:[#allocation7 + $0x80] ss:$12 sps:$4 sm:$0xff]   ;;  %v1200_v30 = vld [vmem:[#allocation7 + $0x90] ss:$12 sps:$4 sm:$0xff]  }
  0x91   : > { %574 = vmatprep.subr.bf16.mxu1 %v1182_v13  ;;  %v1198_v29 = vld [vmem:[#allocation7 + $0x94] ss:$12 sps:$4 sm:$0xff]   ;;  %v1201_v31 = vld [vmem:[#allocation7 + $0x98] ss:$12 sps:$4 sm:$0xff]   ;;  %v1205_v34 = vld [vmem:[#allocation7 + $0xb0] ss:$12 sps:$4 sm:$0xff]  }
  0x92   : > { %353 = vmatpush1.bf16.msra.mxu0 %v1169_v6  ;;  %v1202_v32 = vld [vmem:[#allocation7 + $0xac] ss:$12 sps:$4 sm:$0xff]   ;;  %v1204_v33 = vld [vmem:[#allocation7 + $0xa8] ss:$12 sps:$4 sm:$0xff]   ;;  %vm1416_vm1 = vmmov 0   ;;  %v1676_v36 = vshrl.u32 %v391_v35, 7 }
  0x93   : > { %354 = vmatprep.subr.bf16.mxu0 %v1170_v9  ;;  %v1682_v38 = vld [vmem:[%s1781_s4] sm:$0xf]  ;;  %v1206_v50 = vld [vmem:[#allocation8] sm:$0xff]   ;;  %v1207_v52 = vld [vmem:[#allocation8 + $0x8] sm:$0xff]   ;;  %s965_s28 = sshll.u32 %s1646_s17, 4  ;;  %s1014_s6 = sshll.u32 %s1471_s22, 8 }
  0x94   : > { %575 = vmatpush1.bf16.msra.mxu1 %v1184_v16  ;;  %v393_v37 = vsub.s32 0, %v1676_v36  ;;  %v1208_v53 = vld [vmem:[#allocation8 + $0x10] sm:$0xff]   ;;  %v1209_v54 = vld [vmem:[#allocation8 + $0x18] sm:$0xff]   ;;  %v1210_v55 = vld [vmem:[#allocation8 + $0x20] sm:$0xff]   ;;  %v656_v59 = vadd.s32 8, %v1676_v36  ;;  %v661_v60 = vand.u32 15, %v1676_v36  ;;  %s1733_s7 = scalar_lea.hbm %s1782_s5, %s1014_s6 }
  0x95   : > { %576 = vmatprep.subr.bf16.mxu1 %v1186_v17  ;;  %v1211_v56 = vld [vmem:[#allocation8 + $0x28] sm:$0xff]   ;;  %v1212_v57 = vld [vmem:[#allocation8 + $0x30] sm:$0xff]   ;;  %v1213_v58 = vld [vmem:[#allocation8 + $0x38] sm:$0xff]   ;;  %vm692_vm4 = vcmp.lt.s32.totalorder %v1676_v36, 7  ;;  %vm683_vm5 = vcmp.lt.s32.totalorder %v1676_v36, 1  ;;  %v705_v6 = vsub.s32 1, %v1676_v36 }
  0x96   : > { %355 = vmatpush1.bf16.msra.mxu0 %v1172_v10  ;;  %v394_v39 = vrot.slane %v1682_v38, %v393_v37  ;;  %v668_v61 = vand.u32 15, %v656_v59  ;;  %vm1702_vm6 = vcmp.eq.s32.totalorder %v661_v60, 0  ;;  %s286_s12 = scalar_lea.vmem [#allocation10], %s965_s28  ;;  %s836_s22 = scalar_lea.sflag [#allocation4], %s1646_s17 }
  0x97   : > { %1033 = vmatprep.subr.bf16.mxu0 %v1415_v18  ;;  %s849_s11 = sshll.u32 %s286_s12, 4  ;;  %s1417_s23 = smov [#allocation10]   ;;  %s1728_s11 = int_to_ptr.vmem [resolvable:$true] %s849_s11 }
  0x98   : > { %577 = vmatpush1.bf16.msra.mxu1 %v1188_v20  ;;  %vm1706_vm7 = vcmp.eq.s32.totalorder %v668_v61, 15  ;;  %v706_v20 = vrot.slane %v1682_v38, %v705_v6  ;;  %s1328_s13 = scalar_lea.vmem %s1728_s11, 256  ;;  %s1332_s8 = sshll.u32 %s1417_s23, 4  ;;  %s1333_s8 = int_to_ptr.vmem [resolvable:$false] %s1332_s8 }
  0x99   : > { %975 = vmatmul.mubr.msk.bf16.vlgmr.msra.gmra.mrb[0].mxu0 %vm344_vm0, %v1173_v14  ;;  %578 = vmatprep.subr.bf16.mxu1 %v1190_v21  ;;  %p1329_p10 = scmp.ne.s32.totalorder %s1728_s11, %s1328_s13  ;;  %s1334_s27 = scalar_lea.vmem %s1333_s8, 512 }
  0x9a   : > { %1034 = vmatpush3.bf16.msra.mxu0 %v1177_v15  ;;  %1049 = vmatprep.mubr.msk.bf16.mxu0 %vm1416_vm1, %v1415_v18  ;;  %p1335_p12 = scmp.lt.s32.totalorder %s1728_s11, %s1333_s8  ;;  %p1336_p2 = scmp.lt.s32.totalorder %s1334_s27, %s1328_s13 }
  0x9b   : > { %1035 = vmatprep.subr.bf16.mxu0 %v1415_v18  ;;  %p1330_p3 = pnand %p1329_p10, %p1595_p5 }
  0x9c   : > { %579 = vmatpush1.bf16.msra.mxu1 %v1192_v22  ;;  %p1337_p1 = por %p1336_p2, %p1335_p12 }
  0x9d   : > { %580 = vmatprep.subr.bf16.mxu1 %v1194_v24  ;;  %p1331_p7 = pneg %p1330_p3 }
  0x9e   : > { %1036 = vmatpush3.bf16.msra.mxu0 %v1181_v19 }
  0x9f   : > { %1037 = vmatprep.subr.bf16.mxu0 %v1415_v18  ;;  %p1338_p4 = pnand %p1337_p1, %p1331_p7 }
  0xa0   : > { %581 = vmatpush1.bf16.msra.mxu1 %v1196_v25 }
  0xa1   : > { %582 = vmatprep.subr.bf16.mxu1 %v1198_v29 }
  0xa2   : > { %1038 = vmatpush3.bf16.msra.mxu0 %v1185_v23 }
  0xa3   : > { %1039 = vmatprep.subr.bf16.mxu0 %v1415_v18 }
  0xa4   : > { %583 = vmatpush1.bf16.msra.mxu1 %v1200_v30 }
  0xa5   : > { %584 = vmatprep.subr.bf16.mxu1 %v1202_v32  ;;  %v734_v32 = vsub.s32 2, %v1676_v36 }
  0xa6   : > { %1040 = vmatpush3.bf16.msra.mxu0 %v1189_v26 }
  0xa7   : > { %1041 = vmatprep.subr.bf16.mxu0 %v1415_v18 }
  0xa8   : > { %585 = vmatpush1.bf16.msra.mxu1 %v1204_v33 }
  0xa9   : > { %1053 = vmatprep.subr.bf16.mxu1 %v1415_v18 }
  0xaa   : > { %1042 = vmatpush3.bf16.msra.mxu0 %v1193_v27 }
  0xab   : > { %1043 = vmatprep.subr.bf16.mxu0 %v1415_v18 }
  0xae   : > { %1044 = vmatpush3.bf16.msra.mxu0 %v1197_v28 }
  0xaf   : > { %1045 = vmatprep.subr.bf16.mxu0 %v1415_v18 }
  0xb2   : > { %1046 = vmatpush3.bf16.msra.mxu0 %v1201_v31  ;;  %v405_v31 = vsub.s32 3, %v1676_v36 }
  0xb3   : > { %1047 = vmatprep.subr.bf16.mxu0 %v1415_v18 }
  0xb4   : > { %v406_v33 = vrot.slane %v1682_v38, %v405_v31 }
  0xb6   : > { %1048 = vmatpush3.bf16.msra.mxu0 %v1205_v34  ;;  %v735_v34 = vrot.slane %v1682_v38, %v734_v32 }
 0x16c   : > { %v382_v40 = vpop.f32.mrb[0].mxu0 }
 0x16d   : > { %v395_v41 = vadd.f32 %v394_v39, %v382_v40  ;;  %v1685_v42 = vpop.f32.mrb[1].mxu0 }
 0x16e   : > { %v386_v43 = vpop.f32.mrb[2].mxu0  ;;  %v407_v37 = vadd.f32 %v406_v33, %v1685_v42 }
 0x16f   : > { %v399_v44 = vmul.f32 0.01, %v395_v41  ;;  %v396_v45 = vadd.f32 %v394_v39, %v386_v43  ;;  %v1687_v46 = vpop.f32.mrb[3].mxu0  ;;  %vm397_vm2 = vcmp.gt.f32.partialorder %v395_v41, 0.0 }
 0x170   : > { %v408_v43 = vadd.f32 %v406_v33, %v1687_v46 }
 0x171   : > { %vm398_vm3 = vcmp.gt.f32.partialorder %v396_v45, 0.0  ;;  %v400_v47 = vmul.f32 0.01, %v396_v45  ;;  %v401_v48 = vsel %vm397_vm2, %v395_v41, %v399_v44 }
 0x173   : > { %v402_v49 = vsel %vm398_vm3, %v396_v45, %v400_v47 }
 0x174   : > { %v409_v51 = vpack.c.bf16 %v402_v49, %v401_v48 }
 0x176   : > { %603 = vmatmul.mubr.bf16.vlgmr.msra.gmra.mrb[0].mxu1 %v409_v51  ;;  %1050 = vmatmul.mubr.bf16.vlgmr.msra.gmra.mrb[4].mxu0 %v409_v51 }
 0x177   : > { %1054 = vmatpush3.bf16.msra.mxu1 %v1206_v50  ;;  %1069 = vmatprep.mubr.msk.bf16.mxu1 %vm1416_vm1, %v1415_v18 }
 0x178   : > { %1055 = vmatprep.subr.bf16.mxu1 %v1415_v18 }
 0x17b   : > { %1056 = vmatpush3.bf16.msra.mxu1 %v1207_v52 }
 0x17c   : > { %1057 = vmatprep.subr.bf16.mxu1 %v1415_v18 }
 0x17f   : > { %1058 = vmatpush3.bf16.msra.mxu1 %v1208_v53 }
 0x180   : > { %1059 = vmatprep.subr.bf16.mxu1 %v1415_v18 }
 0x183   : > { %1060 = vmatpush3.bf16.msra.mxu1 %v1209_v54 }
 0x184   : > { %1061 = vmatprep.subr.bf16.mxu1 %v1415_v18 }
 0x187   : > { %1062 = vmatpush3.bf16.msra.mxu1 %v1210_v55 }
 0x188   : > { %1063 = vmatprep.subr.bf16.mxu1 %v1415_v18 }
 0x18b   : > { %1064 = vmatpush3.bf16.msra.mxu1 %v1211_v56 }
 0x18c   : > { %1065 = vmatprep.subr.bf16.mxu1 %v1415_v18 }
 0x18f   : > { %1066 = vmatpush3.bf16.msra.mxu1 %v1212_v57 }
 0x190   : > { %1067 = vmatprep.subr.bf16.mxu1 %v1415_v18 }
 0x193   : > { %1068 = vmatpush3.bf16.msra.mxu1 %v1213_v58 }
 0x249   : > { %v604_v62 = vpop.f32.mrb[0].mxu1  ;;  %v647_v63 = vpop.f32.mrb[4].mxu0 }
 0x24a   : > { %v606_v0 = vpop.f32.mrb[1].mxu1  ;;  %v1051_v1 = vpop.f32.mrb[5].mxu0  ;;  %v681_v7 = vrot.slane %v604_v62, 7  ;;  %v690_v8 = vrot.slane %v647_v63, 1 }
 0x24b   : > { %v608_v2 = vpop.f32.mrb[2].mxu1  ;;  %v650_v3 = vpop.f32.mrb[6].mxu0 }
 0x24c   : > { %v682_v9 = vrot.slane %v608_v2, 7  ;;  %v691_v10 = vrot.slane %v650_v3, 1  ;;  %v610_v11 = vpop.f32.mrb[3].mxu1  ;;  %v1052_v12 = vpop.f32.mrb[7].mxu0 }
 0x24e   : > { %v693_v13 = vsel %vm692_vm4, %v690_v8, %v691_v10  ;;  %v684_v14 = vsel %vm683_vm5, %v681_v7, %v682_v9  ;;  %v685_v15 = vsel %vm683_vm5, %v682_v9, %v681_v7  ;;  %v694_v16 = vsel %vm692_vm4, %v691_v10, %v690_v8 }
 0x24f   : > { %v688_v17 = vsel %vm1702_vm6, 0.0, %v685_v15  ;;  %v698_v18 = vsel %vm1706_vm7, 0.0, %v694_v16  ;;  %v700_v19 = vadd.f32 %v684_v14, %v610_v11 }
 0x250   : > { %v699_v21 = vadd.f32 %v688_v17, %v606_v0 }
 0x251   : > { %v702_v22 = vadd.f32 %v700_v19, %v698_v18 }
 0x252   : > { %v701_v23 = vadd.f32 %v699_v21, %v693_v13 }
 0x253   : > { %v708_v24 = vadd.f32 %v706_v20, %v702_v22 }
 0x254   : > { %v707_v25 = vadd.f32 %v706_v20, %v701_v23 }
 0x255   : > { %vm710_vm8 = vcmp.gt.f32.partialorder %v708_v24, 0.0  ;;  %v712_v26 = vmul.f32 0.01, %v708_v24 }
 0x256   : > { %vm709_vm9 = vcmp.gt.f32.partialorder %v707_v25, 0.0  ;;  %v711_v27 = vmul.f32 0.01, %v707_v25 }
 0x257   : > { %v714_v28 = vsel %vm710_vm8, %v708_v24, %v712_v26 }
 0x258   : > { %v713_v29 = vsel %vm709_vm9, %v707_v25, %v711_v27 }
 0x259   : > { %v715_v30 = vpack.c.bf16 %v714_v28, %v713_v29 }
 0x25b   : > { %1070 = vmatmul.mubr.bf16.vlgmr.msra.gmra.mrb[4].mxu1 %v715_v30 }
 0x32e   : > { %v818_v35 = vpop.f32.mrb[4].mxu1 }
 0x32f   : > { %v819_v39 = vadd.f32 %v818_v35, %v735_v34  ;;  %v1071_v40 = vpop.f32.mrb[5].mxu1 }
 0x330   : > { %v821_v41 = vpop.f32.mrb[6].mxu1 }
 0x331   : > { %v825_v44 = vadd.f32 %v819_v39, %v407_v37  ;;  %v822_v45 = vadd.f32 %v821_v41, %v735_v34  ;;  %v1072_v47 = vpop.f32.mrb[7].mxu1 }
 0x333   : > { %vm827_vm10 = vcmp.gt.f32.partialorder %v825_v44, 0.0  ;;  %v829_v36 = vmul.f32 0.01, %v825_v44  ;;  %v826_v48 = vadd.f32 %v822_v45, %v408_v43 }
 0x335   : > { %v831_v38 = vsel %vm827_vm10, %v825_v44, %v829_v36  ;;  %vm828_vm11 = vcmp.gt.f32.partialorder %v826_v48, 0.0  ;;  %v830_v42 = vmul.f32 0.01, %v826_v48 }
 0x336   : > { %833 = vst [vmem:[%s286_s12] sm:$0xff] %v831_v38 }
 0x337   : > { %v832_v46 = vsel %vm828_vm11, %v826_v48, %v830_v42 }
 0x338   : > { %834 = vst [vmem:[%s286_s12 + $0x8] sm:$0xff] %v832_v46 }
 0x339   : > { %1341 = shalt.err (!%p1338_p4)
}
 0x33a   : > { %s1342_s9 = scalar_lea.hbm %s1733_s7, 256  ;;  %s1346_s26 = scalar_lea.hbm %s1782_s5, 512 }
 0x33b   : > { %p1343_p9 = scmp.ne.s32.totalorder %s1733_s7, %s1342_s9  ;;  %p1347_p8 = scmp.lt.u32.totalorder %s1733_s7, %s1782_s5 }
 0x33c   : > { %p1348_p13 = scmp.lt.u32.totalorder %s1346_s26, %s1342_s9  ;;  %p1350_p10 = scmp.lt.u32.totalorder %s1342_s9, %s1733_s7 }
 0x33d   : > { %p1344_p0 = pnand %p1343_p9, %p1595_p5 }
 0x33e   : > { %p1349_p6 = por %p1348_p13, %p1347_p8 }
 0x33f   : > { %p1345_p11 = pneg %p1344_p0 }
 0x340   : > { %p1351_p3 = por %p1350_p10, %p1349_p6 }
 0x342   : > { %p1352_p7 = pnand %p1351_p3, %p1345_p11 }
 0x344   : > { %1355 = shalt.err (!%p1352_p7)
}
 0x345   : > { %s1418_s6 = smov 128   ;;  %s1419_s14 = smov 8  }
 0x346   : > { %1087 = dma.vmem_to_hbm [thread:$0]  (%p1595_p5), %s1728_s11, 256, %s1733_s7, %s836_s22, %s1418_s6, %s1418_s6, %s1419_s14  }
 0x347 PF: > { %s864_s15 = sand.u32 1, %s1390_s18   ;;  %p1804_p12 = scmp.ne.s32.totalorder %s1787_s25, 0 }
 0x348   : > { %p1805_p2 = scmp.ge.s32.totalorder %s1402_s21, 2  ;;  %s865_s13 = scalar_lea.sflag [#allocation4], %s864_s15 }
 0x34a   : > { %p1104_p1 = pnand %p1805_p2, %p1804_p12 }
 0x34c   : > { %1385 = dma.done.wait (!%p1104_p1), %s865_s13, 256  }
 0x34d   : > { %1387 = vsyncadd (!%p1104_p1), %s865_s13, 4294967040  ;;  %p20_p4 = scmp.ge.s32.totalorder %s1581_s16, 4   ;;  %s1806_s18 = smov %s1394_s19 }
 0x34e   : > { %s1807_s19 = smov %s1398_s20  ;;  %s1808_s20 = smov %s1591_s30 }
 0x34f   : > { %s1809_s21 = smov %s1581_s16  ;;  %22 = sbr.rel (!%p20_p4) target bundleno = 7 (0x7), region = 97 }
 0x356   :  { %870 = vsyncpa [#allocation3], 1 }
 0x357   :  { %872 = vsyncpa [#allocation3 + $0x1], 1 }
 0x358   :  { %873 = vsyncpa [#allocation6], 1 }
 0x359   :  { %874 = vsyncpa [#allocation9], 1 }
 0x35a   :  { %875 = vsyncpa [#allocation4], 1 }
 0x35b   :  { %877 = vsyncpa [#allocation4 + $0x1], 1 }

</bundles_post_ra>
